<compile_context>
chip_gen: v6e
topology: v6e:2x2x1
jax: 0.10.0
libtpu: 0.0.40
codegen_flags: <defaults>
</compile_context>

<pallas_src>
import jax
import jax.numpy as jnp
from jax.experimental import pallas as pl
from jax.experimental.pallas import tpu as pltpu


def mlp_kernel(x_ref, w1_ref, b1_ref, w2_ref, b2_ref, w3_ref, b3_ref, o_ref):
    # x_ref: (8, TB) bf16 ; w1: (6, 8) bf16 ; w2: (4, 6) f32 ; w3: (1, 4) f32
    # b_i: (out, 1) f32 ; o_ref: (1, TB) out_dtype
    x = x_ref[...]                                        # bf16, fed to MXU directly

    # ---- Layer 1 (K=8): MXU, bf16 x bf16 -> f32 accumulate --------------------
    h1 = jnp.dot(w1_ref[...], x, preferred_element_type=jnp.float32)  # (6, TB) f32
    h1 = jnp.maximum(h1 + b1_ref[...], 0.0)

    # ---- Layer 2 (K=6): unrolled VPU broadcast-FMAs on resident f32 weights ---
    w2 = w2_ref[...]                                      # (4, 6) f32
    h2 = b2_ref[...] + w2[:, 0:1] * h1[0:1, :]            # (4, TB)
    for k in range(1, 6):
        h2 = h2 + w2[:, k:k + 1] * h1[k:k + 1, :]
    h2 = jnp.maximum(h2, 0.0)

    # ---- Layer 3 (K=4): unrolled VPU broadcast-FMAs ----------------------------
    w3 = w3_ref[...]                                      # (1, 4) f32
    h3 = b3_ref[...] + w3[:, 0:1] * h2[0:1, :]            # (1, TB)
    for k in range(1, 4):
        h3 = h3 + w3[:, k:k + 1] * h2[k:k + 1, :]

    o_ref[...] = jax.nn.sigmoid(h3).astype(o_ref.dtype)   # EUP sigmoid, lane-dense store


def _choose_tile(B, tb_cap, min_tiles):
    """Lane-multiple batch tile: big enough to amortize per-step overhead,
    >= min_tiles tiles when possible (v7x megacore), minimal lane padding."""
    cap = max(128, (tb_cap // 128) * 128)
    b128 = 128 * pl.cdiv(B, 128)
    n_tiles = max(pl.cdiv(b128, cap), min(min_tiles, b128 // 128))
    tb = 128 * pl.cdiv(pl.cdiv(B, n_tiles), 128)
    return tb, n_tiles


def mlp_forward(x, w1, b1, w2, b2, w3, b3, *, tb=64 * 1024, min_tiles=4,
                out_dtype=jnp.float32):
    """x: (B, 8) f32. Weights w_i: (out, in). Biases b_i: (out, 1). Returns (B, 1)."""
    B, in_dim = x.shape
    TB, n_tiles = _choose_tile(B, tb, min_tiles)
    Bp = TB * n_tiles

    # One wrapper pass: batch -> lanes, f32 -> bf16 (halves the dominant stream).
    # Best case the upstream producer already emits (8, B) bf16 and this fuses away.
    xt = x.T.astype(jnp.bfloat16)                         # (8, B)
    if Bp != B:
        xt = jnp.pad(xt, ((0, 0), (0, Bp - B)))           # zero lanes: harmless, sliced off

    w1_bf = w1.astype(jnp.bfloat16)                       # MXU operand for layer 1
    # w2, w3, biases stay f32 (VPU path; v5e has no bf16 VALU).

    full = lambda arr: pl.BlockSpec(arr.shape, lambda i: (0, 0))   # VMEM-resident

    cost = pl.CostEstimate(
        flops=152 * Bp,              # 2*(6*8 + 4*6 + 1*4) per batch element
        transcendentals=Bp,          # sigmoid
        bytes_accessed=20 * Bp,      # 16 B/elem x in (bf16) + 4 B/elem out (f32)
    )

    out_t = pl.pallas_call(
        mlp_kernel,
        out_shape=jax.ShapeDtypeStruct((1, Bp), out_dtype),
        grid=(n_tiles,),
        in_specs=[
            pl.BlockSpec((in_dim, TB), lambda i: (0, i)),   # x tile (double-buffered)
            full(w1_bf), full(b1),
            full(w2), full(b2),
            full(w3), full(b3),
        ],
        out_specs=pl.BlockSpec((1, TB), lambda i: (0, i)),  # lane-dense output tile
        compiler_params=pltpu.CompilerParams(
            dimension_semantics=("parallel",)),             # shard batch tiles on v7x
        cost_estimate=cost,
    )(xt, w1_bf, b1, w2, b2, w3, b3)

    return out_t[:, :B].T.astype(jnp.float32)               # (B, 1); (1,N)->(N,1) is layout-trivial


def init_linear(key, fan_in, fan_out):
    # Deterministic PyTorch-style init: U(-1/sqrt(fan_in), 1/sqrt(fan_in)).
    kw, kb = jax.random.split(key)
    bound = 1.0 / jnp.sqrt(float(fan_in))
    # Stored as (out, in) (PyTorch layout) so the kernel computes W @ x.
    w = jax.random.uniform(kw, (fan_out, fan_in), jnp.float32, -bound, bound)
    b = jax.random.uniform(kb, (fan_out, 1), jnp.float32, -bound, bound)
    return w, b


if __name__ == "__main__":
    key = jax.random.PRNGKey(0)
    kx, k1, k2, k3 = jax.random.split(key, 4)

    B = 8
    x = jax.random.normal(kx, (B, 8), jnp.float32)
    w1, b1 = init_linear(k1, 8, 6)
    w2, b2 = init_linear(k2, 6, 4)
    w3, b3 = init_linear(k3, 4, 1)

    out = mlp_forward(x, w1, b1, w2, b2, w3, b3)
    jax.block_until_ready(out)

    # Reference in plain JAX, matching the kernel's numerics: x and w1 are
    # rounded to bf16 (MXU operands), everything else f32. Note: this differs
    # from a pure-f32 PyTorch forward by up to ~0.4% relative.
    x_in = x.astype(jnp.bfloat16).astype(jnp.float32)
    w1_in = w1.astype(jnp.bfloat16).astype(jnp.float32)
    ref = jnp.maximum(x_in @ w1_in.T + b1.T, 0.0)
    ref = jnp.maximum(ref @ w2.T + b2.T, 0.0)
    ref = jax.nn.sigmoid(ref @ w3.T + b3.T)

    assert out.shape == (B, 1)
    assert jnp.allclose(out, ref, atol=1e-4), "mismatch vs reference"

    print("KERNEL_OK")
</pallas_src>

<mosaic_0001>
module attributes {stable_mosaic.version = 11 : i64} {
  func.func @mlp_kernel(%arg0: i32, %arg1: memref<8x128xbf16, #tpu.memory_space<vmem>>, %arg2: memref<6x8xbf16, #tpu.memory_space<vmem>>, %arg3: memref<6x1xf32, #tpu.memory_space<vmem>>, %arg4: memref<4x6xf32, #tpu.memory_space<vmem>>, %arg5: memref<4x1xf32, #tpu.memory_space<vmem>>, %arg6: memref<1x4xf32, #tpu.memory_space<vmem>>, %arg7: memref<1x1xf32, #tpu.memory_space<vmem>>, %arg8: memref<1x128xf32, #tpu.memory_space<vmem>>) attributes {dimension_semantics = [#tpu.dimension_semantics<parallel>], iteration_bounds = array<i64: 1>, scalar_prefetch = 0 : i64, scratch_operands = 0 : i64, tpu.core_type = #tpu.core_type<tc>, window_params = [{transform_indices = @transform_0, window_bounds = array<i64: 8, 128>}, {pipeline_mode = #tpu.pipeline_mode<synchronous>, transform_indices = @transform_1, window_bounds = array<i64: 6, 8>}, {pipeline_mode = #tpu.pipeline_mode<synchronous>, transform_indices = @transform_2, window_bounds = array<i64: 6, 1>}, {pipeline_mode = #tpu.pipeline_mode<synchronous>, transform_indices = @transform_3, window_bounds = array<i64: 4, 6>}, {pipeline_mode = #tpu.pipeline_mode<synchronous>, transform_indices = @transform_4, window_bounds = array<i64: 4, 1>}, {pipeline_mode = #tpu.pipeline_mode<synchronous>, transform_indices = @transform_5, window_bounds = array<i64: 1, 4>}, {pipeline_mode = #tpu.pipeline_mode<synchronous>, transform_indices = @transform_6, window_bounds = array<i64: 1, 1>}, {transform_indices = @transform_7, window_bounds = array<i64: 1, 128>}]} {
    %c0 = arith.constant 0 : index
    %c0_0 = arith.constant 0 : index
    %0 = vector.load %arg1[%c0, %c0_0] : memref<8x128xbf16, #tpu.memory_space<vmem>>, vector<8x128xbf16>
    %c0_1 = arith.constant 0 : index
    %c0_2 = arith.constant 0 : index
    %1 = vector.load %arg2[%c0_1, %c0_2] : memref<6x8xbf16, #tpu.memory_space<vmem>>, vector<6x8xbf16>
    %cst = arith.constant dense<0.000000e+00> : vector<6x128xf32>
    %2 = tpu.matmul %1, %0, %cst {dimension_numbers = #tpu.dot_dimension_numbers<[1], [0], [0], [1], [0, 0, 1, 1], [], []>} : vector<6x8xbf16>, vector<8x128xbf16>, vector<6x128xf32> -> vector<6x128xf32>
    %c0_3 = arith.constant 0 : index
    %c0_4 = arith.constant 0 : index
    %3 = vector.load %arg3[%c0_3, %c0_4] : memref<6x1xf32, #tpu.memory_space<vmem>>, vector<6x1xf32>
    %4 = vector.broadcast %3 : vector<6x1xf32> to vector<6x128xf32>
    %5 = arith.addf %2, %4 : vector<6x128xf32>
    %cst_5 = arith.constant 0.000000e+00 : f32
    %6 = vector.broadcast %cst_5 : f32 to vector<6x128xf32>
    %7 = arith.maximumf %5, %6 : vector<6x128xf32>
    %c0_6 = arith.constant 0 : index
    %c0_7 = arith.constant 0 : index
    %8 = vector.load %arg4[%c0_6, %c0_7] : memref<4x6xf32, #tpu.memory_space<vmem>>, vector<4x6xf32>
    %c0_8 = arith.constant 0 : index
    %c0_9 = arith.constant 0 : index
    %9 = vector.load %arg5[%c0_8, %c0_9] : memref<4x1xf32, #tpu.memory_space<vmem>>, vector<4x1xf32>
    %10 = vector.extract_strided_slice %8 {offsets = [0, 0], sizes = [4, 1], strides = [1, 1]} : vector<4x6xf32> to vector<4x1xf32>
    %11 = vector.extract_strided_slice %7 {offsets = [0, 0], sizes = [1, 128], strides = [1, 1]} : vector<6x128xf32> to vector<1x128xf32>
    %12 = vector.broadcast %10 : vector<4x1xf32> to vector<4x128xf32>
    %13 = vector.broadcast %11 : vector<1x128xf32> to vector<4x128xf32>
    %14 = arith.mulf %12, %13 : vector<4x128xf32>
    %15 = vector.broadcast %9 : vector<4x1xf32> to vector<4x128xf32>
    %16 = arith.addf %15, %14 : vector<4x128xf32>
    %17 = vector.extract_strided_slice %8 {offsets = [0, 1], sizes = [4, 1], strides = [1, 1]} : vector<4x6xf32> to vector<4x1xf32>
    %18 = vector.extract_strided_slice %7 {offsets = [1, 0], sizes = [1, 128], strides = [1, 1]} : vector<6x128xf32> to vector<1x128xf32>
    %19 = vector.broadcast %17 : vector<4x1xf32> to vector<4x128xf32>
    %20 = vector.broadcast %18 : vector<1x128xf32> to vector<4x128xf32>
    %21 = arith.mulf %19, %20 : vector<4x128xf32>
    %22 = arith.addf %16, %21 : vector<4x128xf32>
    %23 = vector.extract_strided_slice %8 {offsets = [0, 2], sizes = [4, 1], strides = [1, 1]} : vector<4x6xf32> to vector<4x1xf32>
    %24 = vector.extract_strided_slice %7 {offsets = [2, 0], sizes = [1, 128], strides = [1, 1]} : vector<6x128xf32> to vector<1x128xf32>
    %25 = vector.broadcast %23 : vector<4x1xf32> to vector<4x128xf32>
    %26 = vector.broadcast %24 : vector<1x128xf32> to vector<4x128xf32>
    %27 = arith.mulf %25, %26 : vector<4x128xf32>
    %28 = arith.addf %22, %27 : vector<4x128xf32>
    %29 = vector.extract_strided_slice %8 {offsets = [0, 3], sizes = [4, 1], strides = [1, 1]} : vector<4x6xf32> to vector<4x1xf32>
    %30 = vector.extract_strided_slice %7 {offsets = [3, 0], sizes = [1, 128], strides = [1, 1]} : vector<6x128xf32> to vector<1x128xf32>
    %31 = vector.broadcast %29 : vector<4x1xf32> to vector<4x128xf32>
    %32 = vector.broadcast %30 : vector<1x128xf32> to vector<4x128xf32>
    %33 = arith.mulf %31, %32 : vector<4x128xf32>
    %34 = arith.addf %28, %33 : vector<4x128xf32>
    %35 = vector.extract_strided_slice %8 {offsets = [0, 4], sizes = [4, 1], strides = [1, 1]} : vector<4x6xf32> to vector<4x1xf32>
    %36 = vector.extract_strided_slice %7 {offsets = [4, 0], sizes = [1, 128], strides = [1, 1]} : vector<6x128xf32> to vector<1x128xf32>
    %37 = vector.broadcast %35 : vector<4x1xf32> to vector<4x128xf32>
    %38 = vector.broadcast %36 : vector<1x128xf32> to vector<4x128xf32>
    %39 = arith.mulf %37, %38 : vector<4x128xf32>
    %40 = arith.addf %34, %39 : vector<4x128xf32>
    %41 = vector.extract_strided_slice %8 {offsets = [0, 5], sizes = [4, 1], strides = [1, 1]} : vector<4x6xf32> to vector<4x1xf32>
    %42 = vector.extract_strided_slice %7 {offsets = [5, 0], sizes = [1, 128], strides = [1, 1]} : vector<6x128xf32> to vector<1x128xf32>
    %43 = vector.broadcast %41 : vector<4x1xf32> to vector<4x128xf32>
    %44 = vector.broadcast %42 : vector<1x128xf32> to vector<4x128xf32>
    %45 = arith.mulf %43, %44 : vector<4x128xf32>
    %46 = arith.addf %40, %45 : vector<4x128xf32>
    %cst_10 = arith.constant 0.000000e+00 : f32
    %47 = vector.broadcast %cst_10 : f32 to vector<4x128xf32>
    %48 = arith.maximumf %46, %47 : vector<4x128xf32>
    %c0_11 = arith.constant 0 : index
    %c0_12 = arith.constant 0 : index
    %49 = vector.load %arg6[%c0_11, %c0_12] : memref<1x4xf32, #tpu.memory_space<vmem>>, vector<1x4xf32>
    %c0_13 = arith.constant 0 : index
    %c0_14 = arith.constant 0 : index
    %50 = vector.load %arg7[%c0_13, %c0_14] : memref<1x1xf32, #tpu.memory_space<vmem>>, vector<1x1xf32>
    %51 = vector.extract_strided_slice %49 {offsets = [0, 0], sizes = [1, 1], strides = [1, 1]} : vector<1x4xf32> to vector<1x1xf32>
    %52 = vector.extract_strided_slice %48 {offsets = [0, 0], sizes = [1, 128], strides = [1, 1]} : vector<4x128xf32> to vector<1x128xf32>
    %53 = vector.broadcast %51 : vector<1x1xf32> to vector<1x128xf32>
    %54 = arith.mulf %53, %52 : vector<1x128xf32>
    %55 = vector.broadcast %50 : vector<1x1xf32> to vector<1x128xf32>
    %56 = arith.addf %55, %54 : vector<1x128xf32>
    %57 = vector.extract_strided_slice %49 {offsets = [0, 1], sizes = [1, 1], strides = [1, 1]} : vector<1x4xf32> to vector<1x1xf32>
    %58 = vector.extract_strided_slice %48 {offsets = [1, 0], sizes = [1, 128], strides = [1, 1]} : vector<4x128xf32> to vector<1x128xf32>
    %59 = vector.broadcast %57 : vector<1x1xf32> to vector<1x128xf32>
    %60 = arith.mulf %59, %58 : vector<1x128xf32>
    %61 = arith.addf %56, %60 : vector<1x128xf32>
    %62 = vector.extract_strided_slice %49 {offsets = [0, 2], sizes = [1, 1], strides = [1, 1]} : vector<1x4xf32> to vector<1x1xf32>
    %63 = vector.extract_strided_slice %48 {offsets = [2, 0], sizes = [1, 128], strides = [1, 1]} : vector<4x128xf32> to vector<1x128xf32>
    %64 = vector.broadcast %62 : vector<1x1xf32> to vector<1x128xf32>
    %65 = arith.mulf %64, %63 : vector<1x128xf32>
    %66 = arith.addf %61, %65 : vector<1x128xf32>
    %67 = vector.extract_strided_slice %49 {offsets = [0, 3], sizes = [1, 1], strides = [1, 1]} : vector<1x4xf32> to vector<1x1xf32>
    %68 = vector.extract_strided_slice %48 {offsets = [3, 0], sizes = [1, 128], strides = [1, 1]} : vector<4x128xf32> to vector<1x128xf32>
    %69 = vector.broadcast %67 : vector<1x1xf32> to vector<1x128xf32>
    %70 = arith.mulf %69, %68 : vector<1x128xf32>
    %71 = arith.addf %66, %70 : vector<1x128xf32>
    %72 = arith.negf %71 : vector<1x128xf32>
    %73 = math.exp %72 : vector<1x128xf32>
    %cst_15 = arith.constant 1.000000e+00 : f32
    %74 = vector.broadcast %cst_15 : f32 to vector<1x128xf32>
    %75 = arith.addf %74, %73 : vector<1x128xf32>
    %76 = arith.divf %74, %75 : vector<1x128xf32>
    %c0_16 = arith.constant 0 : index
    %c0_17 = arith.constant 0 : index
    %77 = vector.load %arg8[%c0_16, %c0_17] : memref<1x128xf32, #tpu.memory_space<vmem>>, vector<1x128xf32>
    tpu.vector_store %arg8[%c0_16, %c0_17], %76 {strides = array<i32>} : memref<1x128xf32, #tpu.memory_space<vmem>>, vector<1x128xf32>,
    return
  }
  func.func @transform_0(%arg0: i32) -> (i32, i32) {
    %c0_i32 = arith.constant 0 : i32
    %c0_i32_0 = arith.constant 0 : i32
    return %c0_i32, %arg0 : i32, i32
  }
  func.func @transform_1(%arg0: i32) -> (i32, i32) {
    %c0_i32 = arith.constant 0 : i32
    %c0_i32_0 = arith.constant 0 : i32
    %c0_i32_1 = arith.constant 0 : i32
    return %c0_i32, %c0_i32_0 : i32, i32
  }
  func.func @transform_2(%arg0: i32) -> (i32, i32) {
    %c0_i32 = arith.constant 0 : i32
    %c0_i32_0 = arith.constant 0 : i32
    %c0_i32_1 = arith.constant 0 : i32
    return %c0_i32, %c0_i32_0 : i32, i32
  }
  func.func @transform_3(%arg0: i32) -> (i32, i32) {
    %c0_i32 = arith.constant 0 : i32
    %c0_i32_0 = arith.constant 0 : i32
    %c0_i32_1 = arith.constant 0 : i32
    return %c0_i32, %c0_i32_0 : i32, i32
  }
  func.func @transform_4(%arg0: i32) -> (i32, i32) {
    %c0_i32 = arith.constant 0 : i32
    %c0_i32_0 = arith.constant 0 : i32
    %c0_i32_1 = arith.constant 0 : i32
    return %c0_i32, %c0_i32_0 : i32, i32
  }
  func.func @transform_5(%arg0: i32) -> (i32, i32) {
    %c0_i32 = arith.constant 0 : i32
    %c0_i32_0 = arith.constant 0 : i32
    %c0_i32_1 = arith.constant 0 : i32
    return %c0_i32, %c0_i32_0 : i32, i32
  }
  func.func @transform_6(%arg0: i32) -> (i32, i32) {
    %c0_i32 = arith.constant 0 : i32
    %c0_i32_0 = arith.constant 0 : i32
    %c0_i32_1 = arith.constant 0 : i32
    return %c0_i32, %c0_i32_0 : i32, i32
  }
  func.func @transform_7(%arg0: i32) -> (i32, i32) {
    %c0_i32 = arith.constant 0 : i32
    %c0_i32_0 = arith.constant 0 : i32
    return %c0_i32, %arg0 : i32, i32
  }
}

</mosaic_0001>

<bundles_post_ra>
// kernel: tpu_custom_call.1
= control target key start
LH: loop header
LB: loop body
LE: loop exit
PB: predicated region body
PF: predicated region fallthrough
CT: control target
= control target key end

     0   :  { %s369_s0 = inlined_call_operand.vmem [shape: bf16[8,128], index: 0, kind: input, shape index: {}]   ;;  %s370_s1 = inlined_call_operand.vmem [shape: bf16[6,8], index: 1, kind: input, shape index: {}]   ;;  %s371_s2 = inlined_call_operand.vmem [shape: f32[6,1], index: 2, kind: input, shape index: {}]   ;;  %s372_s3 = inlined_call_operand.vmem [shape: f32[4,6], index: 3, kind: input, shape index: {}]   ;;  %s373_s4 = inlined_call_operand.vmem [shape: f32[4,1], index: 4, kind: input, shape index: {}]   ;;  %s374_s5 = inlined_call_operand.vmem [shape: f32[1,4], index: 5, kind: input, shape index: {}]   ;;  %s375_s6 = inlined_call_operand.<no memory space> [shape: f32[1,1], index: 6, kind: input, shape index: {}]   ;;  %s376_s7 = inlined_call_operand.hbm [shape: f32[1,128], index: 7, kind: output, shape index: {}]  }
   0x1   :  { %v12_v0 = vstv %s375_s6 }
   0x2   :  { %13 = vst [vmem:[#allocation2] sm:$0x1] %v12_v0 }
   0x3   :  { %v30_v1 = vld [vmem:[%s369_s0] sm:$0xf]  ;;  %vm42_vm0 = vcmask 1043456   ;;  %v296_v2 = vmov 0.0   ;;  %vm297_vm1 = vmmov 0   ;;  %vm38_vm2 = vcmask 64512  }
   0x4   :  { %242 = vmatprep.subr.bf16.mxu0 %v296_v2  ;;  %v44_v3 = vsel %vm42_vm0, %v30_v1, 0  ;;  %244 = vmatprep.mubr.msk.bf16.mxu0 %vm297_vm1, %v296_v2  ;;  %v88_v4 = vld [vmem:[%s373_s4] sm:$0xf]  ;;  %v298_v6 = vmov 0  }
   0x5   :  { %243 = vmatpush3.bf16.msra.mxu0 %v44_v3  ;;  %v31_v5 = vld [vmem:[%s370_s1] sm:$0x7]  ;;  %258 = vset.pattern.permute.xlu1 %v298_v6 }
   0x6   :  { %v32_v7 = vld [vmem:[%s371_s2] sm:$0x3f]  ;;  %101 = vperm.xlu1 %258, %v88_v4   ;;  %257 = vset.pattern.permute.xlu0 %v298_v6 }
   0x7   :  { %35 = vperm.xlu0 %257, %v32_v7  }
   0x8   :  { %14 = vsyncpa [#allocation4], 0  ;;  %245 = vmatmul.mubr.msk.bf16.vlgmr.msra.gmra.mxu0 %vm38_vm2, %v31_v5  ;;  %v87_v8 = vld [vmem:[%s372_s3] sm:$0xf]  ;;  %v299_v9 = vmov 1   ;;  %v300_v10 = vmov 3   ;;  %v94_v19 = vlaneseq }
   0x9   :  { %v301_v11 = vmov 2   ;;  %v302_v12 = vmov 4   ;;  %v303_v13 = vmov 5   ;;  %v156_v14 = vld [vmem:[%s374_s5] sm:$0x1]  ;;  %s304_s3 = smov [#allocation3]  }
   0xa   :  { %259 = vset.pattern.permute.xlu1 %v299_v9  ;;  %v157_v15 = vld [vmem:[#allocation2] sm:$0x1]  ;;  %v95_v22 = vshrl.u32 %v94_v19, 7  ;;  %s230_s4 = sshll.u32 %s304_s3, 4  ;;  %s231_s4 = int_to_ptr.vmem [resolvable:$true] %s230_s4 }
   0xb   :  { %106 = vperm.xlu1 %259, %v87_v8   ;;  %91 = vperm.xlu0 %257, %v87_v8   ;;  %s274_s5 = scalar_lea.vmem %s231_s4, 16  ;;  %s278_s11 = scalar_lea.vmem %s231_s4, 32 }
   0xc   :  { %v96_v26 = vsub.s32 0, %v95_v22  ;;  %v111_v27 = vsub.s32 1, %v95_v22  ;;  %v121_v31 = vsub.s32 2, %v95_v22  ;;  %v131_v35 = vsub.s32 3, %v95_v22  ;;  %p275_p0 = scmp.ne.s32.totalorder %s231_s4, %s274_s5  ;;  %p279_p1 = scmp.lt.s32.totalorder %s231_s4, %s231_s4 }
   0xd   :  { %v141_v40 = vsub.s32 4, %v95_v22  ;;  %v151_v45 = vsub.s32 5, %v95_v22  ;;  %p280_p2 = scmp.lt.s32.totalorder %s278_s11, %s274_s5 }
   0xf   :  { %261 = vset.pattern.permute.xlu1 %v300_v10  ;;  %260 = vset.pattern.permute.xlu0 %v301_v11  ;;  %p281_p3 = por %p280_p2, %p279_p1 }
  0x10   :  { %126 = vperm.xlu1 %261, %v87_v8   ;;  %116 = vperm.xlu0 %260, %v87_v8  }
  0x11   :  { %p282_p4 = pnand %p281_p3, %p275_p0 }
  0x14   :  { %262 = vset.pattern.permute.xlu1 %v302_v12  ;;  %263 = vset.pattern.permute.xlu0 %v303_v13 }
  0x15   :  { %136 = vperm.xlu1 %262, %v87_v8   ;;  %146 = vperm.xlu0 %263, %v87_v8  }
  0x19   :  { %264 = vset.pattern.permute.xlu1 %v298_v6  ;;  %266 = vset.pattern.permute.xlu0 %v298_v6 }
  0x1a   :  { %160 = vperm.xlu1 %264, %v156_v14   ;;  %170 = vperm.xlu0 %266, %v157_v15  }
  0x1e   :  { %265 = vset.pattern.permute.xlu1 %v299_v9  ;;  %269 = vset.pattern.permute.xlu0 %v300_v10 }
  0x1f   :  { %179 = vperm.xlu1 %265, %v156_v14  }
  0x23   :  { %267 = vset.pattern.permute.xlu1 %v301_v11 }
  0x24   :  { %192 = vperm.xlu1 %267, %v156_v14  }
  0x28   :  { %268 = vset.pattern.permute.xlu1 %v300_v10 }
  0x29   :  { %205 = vperm.xlu1 %268, %v156_v14  }
  0x81   :  { %v102_v16 = vpop.permute.xlu1 %101 }
  0x82   :  { %v36_v21 = vpop.permute.xlu0 %35 }
  0x86   :  { %v107_v17 = vpop.permute.xlu1 %106  ;;  %v92_v28 = vpop.permute.xlu0 %91 }
  0x8b   :  { %v127_v18 = vpop.permute.xlu1 %126  ;;  %v117_v41 = vpop.permute.xlu0 %116 }
  0x90   :  { %v137_v20 = vpop.permute.xlu1 %136  ;;  %v147_v53 = vpop.permute.xlu0 %146 }
  0x95   :  { %v161_v24 = vpop.permute.xlu1 %160  ;;  %v171_v59 = vpop.permute.xlu0 %170 }
  0x96   :  { %v166_v62 = vrot.slane %v161_v24, %v96_v26  ;;  %v176_v2 = vrot.slane %v171_v59, %v96_v26 }
  0x9a   :  { %v180_v37 = vpop.permute.xlu1 %179 }
  0x9b   :  { %v185_v0 = vrot.slane %v180_v37, %v96_v26 }
  0x9f   :  { %v193_v49 = vpop.permute.xlu1 %192 }
  0xa0   :  { %v198_v61 = vrot.slane %v193_v49, %v96_v26 }
  0xa4   :  { %v206_v58 = vpop.permute.xlu1 %205 }
  0xa5   :  { %v211_v1 = vrot.slane %v206_v58, %v96_v26 }
  0xc8   :  { %v80_v23 = vpop.f32.mrf.mxu0 }
  0xc9   :  { %v81_v25 = vadd.f32 %v80_v23, %v36_v21 }
  0xca   :  { %v246_v29 = vpop.f32.mrf.mxu0 }
  0xcb   :  { %v86_v30 = vmax.f32 %v81_v25, 0.0 }
  0xcc   :  { %v83_v32 = vpop.f32.mrf.mxu0 }
  0xcd   :  { %v97_v33 = vrot.slane %v86_v30, %v96_v26  ;;  %v112_v34 = vrot.slane %v86_v30, %v111_v27  ;;  %v122_v39 = vrot.slane %v86_v30, %v121_v31  ;;  %v132_v44 = vrot.slane %v86_v30, %v131_v35 }
  0xce   :  { %v247_v36 = vpop.f32.mrf.mxu0  ;;  %v142_v48 = vrot.slane %v86_v30, %v141_v40  ;;  %v152_v52 = vrot.slane %v86_v30, %v151_v45 }
  0xcf   :  { %v98_v38 = vmul.f32 %v97_v33, %v92_v28  ;;  %v113_v43 = vmul.f32 %v112_v34, %v107_v17  ;;  %v123_v47 = vmul.f32 %v122_v39, %v117_v41  ;;  %v133_v51 = vmul.f32 %v132_v44, %v127_v18 }
  0xd0   :  { %v143_v55 = vmul.f32 %v142_v48, %v137_v20  ;;  %v153_v57 = vmul.f32 %v152_v52, %v147_v53 }
  0xd1   :  { %v104_v42 = vadd.f32 %v102_v16, %v98_v38 }
  0xd3   :  { %v114_v46 = vadd.f32 %v113_v43, %v104_v42 }
  0xd5   :  { %v124_v50 = vadd.f32 %v123_v47, %v114_v46 }
  0xd7   :  { %v134_v54 = vadd.f32 %v133_v51, %v124_v50 }
  0xd9   :  { %v144_v56 = vadd.f32 %v143_v55, %v134_v54 }
  0xdb   :  { %v154_v60 = vadd.f32 %v153_v57, %v144_v56 }
  0xdd   :  { %v155_v63 = vmax.f32 %v154_v60, 0.0 }
  0xdf   :  { %v167_v3 = vmul.f32 %v166_v62, %v155_v63  ;;  %v186_v4 = vmul.f32 %v185_v0, %v155_v63  ;;  %v199_v5 = vmul.f32 %v198_v61, %v155_v63  ;;  %v212_v7 = vmul.f32 %v211_v1, %v155_v63 }
  0xe1   :  { %v188_v6 = vrot.slane %v186_v4, 1  ;;  %v177_v8 = vadd.f32 %v176_v2, %v167_v3  ;;  %v201_v9 = vrot.slane %v199_v5, 2  ;;  %v214_v11 = vrot.slane %v212_v7, 3 }
  0xe3   :  { %v190_v10 = vadd.f32 %v188_v6, %v177_v8 }
  0xe5   :  { %v203_v12 = vadd.f32 %v201_v9, %v190_v10 }
  0xe7   :  { %v216_v13 = vadd.f32 %v214_v11, %v203_v12 }
  0xe9   :  { %v239_v14 = vmul.f32 -1.442695, %v216_v13 }
  0xeb   :  { %270 = vpow2.f32 %v239_v14 }
  0xf8   :  { %v271_v15 = vpop.eup %270 }
  0xf9   :  { %v220_v16 = vadd.f32 1.0, %v271_v15 }
  0xfb   :  { %272 = vrcp.f32 %v220_v16 }
 0x108   :  { %v273_v17 = vpop.eup %272 }
 0x109   :  { %223 = vst [vmem:[#allocation3] sm:$0x1] %v273_v17 }
 0x10a   :  { %285 = shalt.err (!%p282_p4)
}
 0x10b   :  { %233 = dma.vmem_to_hbm [thread:$0]  %s231_s4, 16, %s376_s7, [#allocation4]  }
 0x10c   :  { %294 = dma.done.wait [#allocation4], 16  }
 0x10d   :  { %295 = vsyncadd [#allocation4], 4294967280 }
 0x10e   :  { %237 = vsyncpa [#allocation4], 1 }

</bundles_post_ra>
